<compile_context>
chip_gen: v5e
topology: v5e:2x2
jax: 0.10.0
libtpu: 0.0.40
codegen_flags: <defaults>
</compile_context>

<pallas_src>
import functools

import jax
import jax.numpy as jnp
from jax.experimental import pallas as pl
from jax.experimental.pallas import tpu as pltpu

EPS = 1e-5
F = 16            # model feature width
FOLD = 8          # samples folded into one 128-lane row
LANES = FOLD * F  # 128


def jsc_kernel(x_ref, scale_ref, shift_ref,
               w1_ref, b1_ref, w2_ref, b2_ref, w3_ref, b3_ref,
               o_ref):
    # x_ref: [TBR, 128] folded rows (8 samples x 16 features per row).
    h = x_ref[...]

    # BatchNorm1d (batch statistics folded into affine scale/shift) + ReLU.
    h = jnp.maximum(h * scale_ref[...] + shift_ref[...], 0.0)

    # Linear(16,16) + ReLU  (block-diagonal [128,128] weight).
    h = jnp.maximum(
        jnp.dot(h, w1_ref[...], preferred_element_type=jnp.float32,
                precision=jax.lax.Precision.HIGHEST) + b1_ref[...], 0.0)

    # Linear(16,16) + ReLU.
    h = jnp.maximum(
        jnp.dot(h, w2_ref[...], preferred_element_type=jnp.float32,
                precision=jax.lax.Precision.HIGHEST) + b2_ref[...], 0.0)

    # Linear(16,5) + ReLU (per-sample output padded to 16 lanes; lanes 5..15
    # are exactly zero because W3/b3 are zero-padded).
    h = jnp.maximum(
        jnp.dot(h, w3_ref[...], preferred_element_type=jnp.float32,
                precision=jax.lax.Precision.HIGHEST) + b3_ref[...], 0.0)

    o_ref[...] = h.astype(o_ref.dtype)


def _fold_weight(w, out_dim):
    """[16, out_dim] -> block-diagonal [128, 128] (out padded to 16)."""
    wp = jnp.zeros((F, F), jnp.float32).at[:, :out_dim].set(w.astype(jnp.float32))
    return jnp.kron(jnp.eye(FOLD, dtype=jnp.float32), wp)


def _fold_vector(v, out_dim):
    """[out_dim] -> [1, 128] (padded to 16 per sample, tiled over 8 samples)."""
    vp = jnp.zeros((F,), jnp.float32).at[:out_dim].set(v.astype(jnp.float32))
    return jnp.tile(vp, (FOLD,)).reshape(1, LANES)


@functools.partial(jax.jit, static_argnames=("block_rows",))
def jsc_three_linear_layers(x, params, *, block_rows=4096):
    """x: [B, 16] float32 -> [B, 5] float32."""
    gamma, beta, w1, b1, w2, b2, w3, b3 = params
    B, feat = x.shape
    assert feat == F

    xf = x.astype(jnp.float32)

    # ---- BatchNorm1d training-mode batch stats (biased variance), computed
    # ---- once in the wrapper so batch tiling inside the kernel stays exact.
    mean = jnp.mean(xf, axis=0)                          # [16]
    var = jnp.mean(jnp.square(xf - mean), axis=0)        # [16] (biased)
    scale = gamma.astype(jnp.float32) * jax.lax.rsqrt(var + EPS)
    shift = beta.astype(jnp.float32) - mean * scale

    # ---- Fold 8 samples per 128-lane row; pad so the batch tiles evenly. ----
    rows = pl.cdiv(B, FOLD)
    tbr = min(block_rows, max(8, pl.next_power_of_2(rows)))   # multiple of 8
    rows_p = pl.cdiv(rows, tbr) * tbr
    b_pad = rows_p * FOLD
    x_fold = (jnp.zeros((b_pad, F), jnp.float32).at[:B].set(xf)
              .reshape(rows_p, LANES))

    w1f, b1f = _fold_weight(w1, 16), _fold_vector(b1, 16)
    w2f, b2f = _fold_weight(w2, 16), _fold_vector(b2, 16)
    w3f, b3f = _fold_weight(w3, 5), _fold_vector(b3, 5)
    scale_f = jnp.tile(scale, (FOLD,)).reshape(1, LANES)
    shift_f = jnp.tile(shift, (FOLD,)).reshape(1, LANES)

    const_map = lambda i: (0, 0)
    param_specs = [pl.BlockSpec(a.shape, const_map)
                   for a in (scale_f, shift_f, w1f, b1f, w2f, b2f, w3f, b3f)]

    out_fold = pl.pallas_call(
        jsc_kernel,
        out_shape=jax.ShapeDtypeStruct((rows_p, LANES), jnp.float32),
        grid=(rows_p // tbr,),
        in_specs=[pl.BlockSpec((tbr, LANES), lambda i: (i, 0))] + param_specs,
        out_specs=pl.BlockSpec((tbr, LANES), lambda i: (i, 0)),
        compiler_params=pltpu.CompilerParams(
            dimension_semantics=("parallel",),    # megacore split on v7x
            vmem_limit_bytes=48 << 20,            # tiles ~4-10 MiB, safe on 64 MiB v7x
        ),
    )(x_fold, scale_f, shift_f, w1f, b1f, w2f, b2f, w3f, b3f)

    # Un-fold and slice back to [B, 5].
    return out_fold.reshape(b_pad, F)[:B, :5]


def init_params(key):
    """Deterministic synthetic parameters matching the module's shapes."""
    ks = jax.random.split(key, 6)
    # BatchNorm1d(16) default affine init: gamma=1, beta=0.
    gamma = jnp.ones((F,), jnp.float32)
    beta = jnp.zeros((F,), jnp.float32)
    # Linear layers: weights stored [in, out], biases [out].
    w1 = jax.random.uniform(ks[0], (F, F), jnp.float32, -0.25, 0.25)
    b1 = jax.random.uniform(ks[1], (F,), jnp.float32, -0.25, 0.25)
    w2 = jax.random.uniform(ks[2], (F, F), jnp.float32, -0.25, 0.25)
    b2 = jax.random.uniform(ks[3], (F,), jnp.float32, -0.25, 0.25)
    w3 = jax.random.uniform(ks[4], (F, 5), jnp.float32, -0.25, 0.25)
    b3 = jax.random.uniform(ks[5], (5,), jnp.float32, -0.25, 0.25)
    return gamma, beta, w1, b1, w2, b2, w3, b3


def reference(x, params):
    """Plain-JAX reference of the same forward pass (training-mode BN)."""
    gamma, beta, w1, b1, w2, b2, w3, b3 = params
    hp = jax.lax.Precision.HIGHEST
    mean = jnp.mean(x, axis=0)
    var = jnp.mean(jnp.square(x - mean), axis=0)
    h = (x - mean) * jax.lax.rsqrt(var + EPS) * gamma + beta
    h = jnp.maximum(h, 0.0)
    h = jnp.maximum(jnp.dot(h, w1, precision=hp) + b1, 0.0)
    h = jnp.maximum(jnp.dot(h, w2, precision=hp) + b2, 0.0)
    h = jnp.maximum(jnp.dot(h, w3, precision=hp) + b3, 0.0)
    return h


if __name__ == "__main__":
    key = jax.random.PRNGKey(0)
    k_x1, k_x2, k_p = jax.random.split(key, 3)
    params = init_params(k_p)

    # Small batches; 200 exercises the fold/pad remainder path.
    for B, kx in ((8, k_x1), (200, k_x2)):
        x = jax.random.normal(kx, (B, F), jnp.float32)
        out = jax.block_until_ready(jsc_three_linear_layers(x, params))
        ref = jax.block_until_ready(reference(x, params))
        assert out.shape == (B, 5)
        assert jnp.allclose(out, ref, atol=1e-4, rtol=1e-4), \
            f"mismatch vs reference at B={B}"

    print("KERNEL_OK")
</pallas_src>

<mosaic_0001>
module attributes {stable_mosaic.version = 11 : i64} {
  func.func @jsc_kernel(%arg0: i32, %arg1: memref<8x128xf32, #tpu.memory_space<vmem>>, %arg2: memref<1x128xf32, #tpu.memory_space<vmem>>, %arg3: memref<1x128xf32, #tpu.memory_space<vmem>>, %arg4: memref<128x128xf32, #tpu.memory_space<vmem>>, %arg5: memref<1x128xf32, #tpu.memory_space<vmem>>, %arg6: memref<128x128xf32, #tpu.memory_space<vmem>>, %arg7: memref<1x128xf32, #tpu.memory_space<vmem>>, %arg8: memref<128x128xf32, #tpu.memory_space<vmem>>, %arg9: memref<1x128xf32, #tpu.memory_space<vmem>>, %arg10: memref<8x128xf32, #tpu.memory_space<vmem>>) attributes {dimension_semantics = [#tpu.dimension_semantics<parallel>], iteration_bounds = array<i64: 1>, scalar_prefetch = 0 : i64, scratch_operands = 0 : i64, tpu.core_type = #tpu.core_type<tc>, window_params = [{transform_indices = @transform_0, window_bounds = array<i64: 8, 128>}, {pipeline_mode = #tpu.pipeline_mode<synchronous>, transform_indices = @transform_1, window_bounds = array<i64: 1, 128>}, {pipeline_mode = #tpu.pipeline_mode<synchronous>, transform_indices = @transform_2, window_bounds = array<i64: 1, 128>}, {pipeline_mode = #tpu.pipeline_mode<synchronous>, transform_indices = @transform_3, window_bounds = array<i64: 128, 128>}, {pipeline_mode = #tpu.pipeline_mode<synchronous>, transform_indices = @transform_4, window_bounds = array<i64: 1, 128>}, {pipeline_mode = #tpu.pipeline_mode<synchronous>, transform_indices = @transform_5, window_bounds = array<i64: 128, 128>}, {pipeline_mode = #tpu.pipeline_mode<synchronous>, transform_indices = @transform_6, window_bounds = array<i64: 1, 128>}, {pipeline_mode = #tpu.pipeline_mode<synchronous>, transform_indices = @transform_7, window_bounds = array<i64: 128, 128>}, {pipeline_mode = #tpu.pipeline_mode<synchronous>, transform_indices = @transform_8, window_bounds = array<i64: 1, 128>}, {transform_indices = @transform_9, window_bounds = array<i64: 8, 128>}]} {
    %c0 = arith.constant 0 : index
    %c0_0 = arith.constant 0 : index
    %0 = vector.load %arg1[%c0, %c0_0] : memref<8x128xf32, #tpu.memory_space<vmem>>, vector<8x128xf32>
    %c0_1 = arith.constant 0 : index
    %c0_2 = arith.constant 0 : index
    %1 = vector.load %arg2[%c0_1, %c0_2] : memref<1x128xf32, #tpu.memory_space<vmem>>, vector<1x128xf32>
    %2 = vector.broadcast %1 : vector<1x128xf32> to vector<8x128xf32>
    %3 = arith.mulf %0, %2 : vector<8x128xf32>
    %c0_3 = arith.constant 0 : index
    %c0_4 = arith.constant 0 : index
    %4 = vector.load %arg3[%c0_3, %c0_4] : memref<1x128xf32, #tpu.memory_space<vmem>>, vector<1x128xf32>
    %5 = vector.broadcast %4 : vector<1x128xf32> to vector<8x128xf32>
    %6 = arith.addf %3, %5 : vector<8x128xf32>
    %cst = arith.constant 0.000000e+00 : f32
    %7 = vector.broadcast %cst : f32 to vector<8x128xf32>
    %8 = arith.maximumf %6, %7 : vector<8x128xf32>
    %c0_5 = arith.constant 0 : index
    %c0_6 = arith.constant 0 : index
    %9 = vector.load %arg4[%c0_5, %c0_6] : memref<128x128xf32, #tpu.memory_space<vmem>>, vector<128x128xf32>
    %cst_7 = arith.constant dense<0.000000e+00> : vector<8x128xf32>
    %10 = tpu.matmul %8, %9, %cst_7 {dimension_numbers = #tpu.dot_dimension_numbers<[1], [0], [0], [1], [0, 0, 1, 1], [], []>, precision = #tpu.contract_precision<fp32>} : vector<8x128xf32>, vector<128x128xf32>, vector<8x128xf32> -> vector<8x128xf32>
    %c0_8 = arith.constant 0 : index
    %c0_9 = arith.constant 0 : index
    %11 = vector.load %arg5[%c0_8, %c0_9] : memref<1x128xf32, #tpu.memory_space<vmem>>, vector<1x128xf32>
    %12 = vector.broadcast %11 : vector<1x128xf32> to vector<8x128xf32>
    %13 = arith.addf %10, %12 : vector<8x128xf32>
    %cst_10 = arith.constant 0.000000e+00 : f32
    %14 = vector.broadcast %cst_10 : f32 to vector<8x128xf32>
    %15 = arith.maximumf %13, %14 : vector<8x128xf32>
    %c0_11 = arith.constant 0 : index
    %c0_12 = arith.constant 0 : index
    %16 = vector.load %arg6[%c0_11, %c0_12] : memref<128x128xf32, #tpu.memory_space<vmem>>, vector<128x128xf32>
    %cst_13 = arith.constant dense<0.000000e+00> : vector<8x128xf32>
    %17 = tpu.matmul %15, %16, %cst_13 {dimension_numbers = #tpu.dot_dimension_numbers<[1], [0], [0], [1], [0, 0, 1, 1], [], []>, precision = #tpu.contract_precision<fp32>} : vector<8x128xf32>, vector<128x128xf32>, vector<8x128xf32> -> vector<8x128xf32>
    %c0_14 = arith.constant 0 : index
    %c0_15 = arith.constant 0 : index
    %18 = vector.load %arg7[%c0_14, %c0_15] : memref<1x128xf32, #tpu.memory_space<vmem>>, vector<1x128xf32>
    %19 = vector.broadcast %18 : vector<1x128xf32> to vector<8x128xf32>
    %20 = arith.addf %17, %19 : vector<8x128xf32>
    %cst_16 = arith.constant 0.000000e+00 : f32
    %21 = vector.broadcast %cst_16 : f32 to vector<8x128xf32>
    %22 = arith.maximumf %20, %21 : vector<8x128xf32>
    %c0_17 = arith.constant 0 : index
    %c0_18 = arith.constant 0 : index
    %23 = vector.load %arg8[%c0_17, %c0_18] : memref<128x128xf32, #tpu.memory_space<vmem>>, vector<128x128xf32>
    %cst_19 = arith.constant dense<0.000000e+00> : vector<8x128xf32>
    %24 = tpu.matmul %22, %23, %cst_19 {dimension_numbers = #tpu.dot_dimension_numbers<[1], [0], [0], [1], [0, 0, 1, 1], [], []>, precision = #tpu.contract_precision<fp32>} : vector<8x128xf32>, vector<128x128xf32>, vector<8x128xf32> -> vector<8x128xf32>
    %c0_20 = arith.constant 0 : index
    %c0_21 = arith.constant 0 : index
    %25 = vector.load %arg9[%c0_20, %c0_21] : memref<1x128xf32, #tpu.memory_space<vmem>>, vector<1x128xf32>
    %26 = vector.broadcast %25 : vector<1x128xf32> to vector<8x128xf32>
    %27 = arith.addf %24, %26 : vector<8x128xf32>
    %cst_22 = arith.constant 0.000000e+00 : f32
    %28 = vector.broadcast %cst_22 : f32 to vector<8x128xf32>
    %29 = arith.maximumf %27, %28 : vector<8x128xf32>
    %c0_23 = arith.constant 0 : index
    %c0_24 = arith.constant 0 : index
    %30 = vector.load %arg10[%c0_23, %c0_24] : memref<8x128xf32, #tpu.memory_space<vmem>>, vector<8x128xf32>
    tpu.vector_store %arg10[%c0_23, %c0_24], %29 {strides = array<i32>} : memref<8x128xf32, #tpu.memory_space<vmem>>, vector<8x128xf32>,
    return
  }
  func.func @transform_0(%arg0: i32) -> (i32, i32) {
    %c0_i32 = arith.constant 0 : i32
    %c0_i32_0 = arith.constant 0 : i32
    return %arg0, %c0_i32 : i32, i32
  }
  func.func @transform_1(%arg0: i32) -> (i32, i32) {
    %c0_i32 = arith.constant 0 : i32
    %c0_i32_0 = arith.constant 0 : i32
    %c0_i32_1 = arith.constant 0 : i32
    return %c0_i32, %c0_i32_0 : i32, i32
  }
  func.func @transform_2(%arg0: i32) -> (i32, i32) {
    %c0_i32 = arith.constant 0 : i32
    %c0_i32_0 = arith.constant 0 : i32
    %c0_i32_1 = arith.constant 0 : i32
    return %c0_i32, %c0_i32_0 : i32, i32
  }
  func.func @transform_3(%arg0: i32) -> (i32, i32) {
    %c0_i32 = arith.constant 0 : i32
    %c0_i32_0 = arith.constant 0 : i32
    %c0_i32_1 = arith.constant 0 : i32
    return %c0_i32, %c0_i32_0 : i32, i32
  }
  func.func @transform_4(%arg0: i32) -> (i32, i32) {
    %c0_i32 = arith.constant 0 : i32
    %c0_i32_0 = arith.constant 0 : i32
    %c0_i32_1 = arith.constant 0 : i32
    return %c0_i32, %c0_i32_0 : i32, i32
  }
  func.func @transform_5(%arg0: i32) -> (i32, i32) {
    %c0_i32 = arith.constant 0 : i32
    %c0_i32_0 = arith.constant 0 : i32
    %c0_i32_1 = arith.constant 0 : i32
    return %c0_i32, %c0_i32_0 : i32, i32
  }
  func.func @transform_6(%arg0: i32) -> (i32, i32) {
    %c0_i32 = arith.constant 0 : i32
    %c0_i32_0 = arith.constant 0 : i32
    %c0_i32_1 = arith.constant 0 : i32
    return %c0_i32, %c0_i32_0 : i32, i32
  }
  func.func @transform_7(%arg0: i32) -> (i32, i32) {
    %c0_i32 = arith.constant 0 : i32
    %c0_i32_0 = arith.constant 0 : i32
    %c0_i32_1 = arith.constant 0 : i32
    return %c0_i32, %c0_i32_0 : i32, i32
  }
  func.func @transform_8(%arg0: i32) -> (i32, i32) {
    %c0_i32 = arith.constant 0 : i32
    %c0_i32_0 = arith.constant 0 : i32
    %c0_i32_1 = arith.constant 0 : i32
    return %c0_i32, %c0_i32_0 : i32, i32
  }
  func.func @transform_9(%arg0: i32) -> (i32, i32) {
    %c0_i32 = arith.constant 0 : i32
    %c0_i32_0 = arith.constant 0 : i32
    return %arg0, %c0_i32 : i32, i32
  }
}

</mosaic_0001>

<bundles_post_ra>
// kernel: tile.43
= control target key start
LH: loop header
LB: loop body
LE: loop exit
PB: predicated region body
PF: predicated region fallthrough
CT: control target
= control target key end

     0   :  { %s22_s0 = inlined_call_operand.vmem [shape: f32[16], index: 0, kind: input, shape index: {}]   ;;  %s23_s1 = inlined_call_operand.vmem [shape: f32[8,16], index: 1, kind: output, shape index: {}]  }
   0x1   :  { %v4_v0 = vld [vmem:[%s22_s0] ss:$0 sm:$0xff] }
   0x2   :  { %5 = vst [vmem:[%s23_s1] sm:$0xff] %v4_v0 }

// kernel: tile.44
= control target key start
LH: loop header
LB: loop body
LE: loop exit
PB: predicated region body
PF: predicated region fallthrough
CT: control target
= control target key end

     0   :  { %s67_s10 = smov 112   ;;  %s68_s11 = smov 80   ;;  %vm3_vm0 = vcmask 130048   ;;  %vm9_vm1 = vcmask 1048448   ;;  %vm15_vm2 = vcmask 917248   ;;  %vm21_vm3 = vcmask 786048   ;;  %s111_s0 = inlined_call_operand.vmem [shape: f32[8,16], index: 0, kind: input, shape index: {}]   ;;  %s112_s1 = inlined_call_operand.vmem [shape: f32[1,128], index: 1, kind: output, shape index: {}]  }
   0x1   :  { %v53_v0 = vld [vmem:[%s111_s0 + $0x7] sm:$0x1]   ;;  %v55_v1 = vld [vmem:[%s111_s0 + $0x5] sm:$0x1]   ;;  %v57_v2 = vld [vmem:[%s111_s0 + $0x3] sm:$0x1]  }
   0x2   :  { %7 = vrot.lane.b32.xlu0 %v53_v0, %s67_s10  ;;  %19 = vrot.lane.b32.xlu1 %v55_v1, %s68_s11  ;;  %s69_s14 = smov 48   ;;  %v54_v3 = vld [vmem:[%s111_s0 + $0x6] sm:$0x1]   ;;  %v56_v4 = vld [vmem:[%s111_s0 + $0x4] sm:$0x1]   ;;  %s70_s21 = smov 96  }
   0x3   :  { %31 = vrot.lane.b32.xlu2 %v57_v2, %s69_s14  ;;  %v58_v5 = vld [vmem:[%s111_s0 + $0x2] sm:$0x1]   ;;  %s71_s22 = smov 64   ;;  %s72_s23 = smov 32   ;;  %v59_v6 = vld [vmem:[%s111_s0 + $0x1] sm:$0x1]  }
   0x4   :  { %s73_s26 = smov 16   ;;  %v2_v7 = vld [vmem:[%s111_s0] sm:$0x1]   ;;  %vm27_vm4 = vcmask 654848   ;;  %vm33_vm5 = vcmask 523648   ;;  %vm39_vm6 = vcmask 392448  }
   0x5   :  { %4 = vst.msk [vmem:[#allocation0] sm:$0x1] %vm3_vm0, %v2_v7   ;;  %vm45_vm7 = vcmask 261248  }
   0xa   :  { %13 = vrot.lane.b32.xlu0 %v54_v3, %s70_s21  ;;  %25 = vrot.lane.b32.xlu1 %v56_v4, %s71_s22 }
   0xb   :  { %37 = vrot.lane.b32.xlu2 %v58_v5, %s72_s23 }
  0x12   :  { %43 = vrot.lane.b32.xlu0 %v59_v6, %s73_s26 }
  0x5d   :  { %v32_v8 = vpop.permute.xlu2 %31  }
  0x65   :  { %v38_v9 = vpop.permute.xlu2 %37  }
  0x74   :  { %v8_v10 = vpop.permute.xlu0 %7   ;;  %v20_v11 = vpop.permute.xlu1 %19  }
  0x75   :  { %10 = vst.msk [vmem:[#allocation0] sm:$0x1] %vm9_vm1, %v8_v10  }
  0x7c   :  { %v14_v12 = vpop.permute.xlu0 %13   ;;  %v26_v13 = vpop.permute.xlu1 %25  }
  0x7d   :  { %16 = vst.msk [vmem:[#allocation0] sm:$0x1] %vm15_vm2, %v14_v12  }
  0x7e   :  { %22 = vst.msk [vmem:[#allocation0] sm:$0x1] %vm21_vm3, %v20_v11  }
  0x7f   :  { %28 = vst.msk [vmem:[#allocation0] sm:$0x1] %vm27_vm4, %v26_v13  }
  0x80   :  { %34 = vst.msk [vmem:[#allocation0] sm:$0x1] %vm33_vm5, %v32_v8  }
  0x81   :  { %40 = vst.msk [vmem:[#allocation0] sm:$0x1] %vm39_vm6, %v38_v9  }
  0x84   :  { %v44_v14 = vpop.permute.xlu0 %43  }
  0x85   :  { %46 = vst.msk [vmem:[#allocation0] sm:$0x1] %vm45_vm7, %v44_v14  }
  0x8c   :  { %v49_v15 = vld [vmem:[#allocation0] sm:$0x1] }
  0x8d   :  { %52 = vst [vmem:[%s112_s1] sm:$0x1] %v49_v15 }

// kernel: jsc_three_linear_layers.1
= control target key start
LH: loop header
LB: loop body
LE: loop exit
PB: predicated region body
PF: predicated region fallthrough
CT: control target
= control target key end

     0   :  { %s2036_s3 = inlined_call_operand.vmem [shape: f32[128,128], index: 3, kind: input, shape index: {}]   ;;  %s2037_s1 = inlined_call_operand.vmem [shape: f32[1,128], index: 1, kind: input, shape index: {}]   ;;  %s2038_s2 = inlined_call_operand.vmem [shape: f32[1,128], index: 2, kind: input, shape index: {}]   ;;  %s2039_s4 = inlined_call_operand.vmem [shape: f32[1,128], index: 4, kind: input, shape index: {}]   ;;  %s2040_s0 = inlined_call_operand.vmem [shape: f32[8,128], index: 0, kind: input, shape index: {}]   ;;  %s2041_s5 = inlined_call_operand.vmem [shape: f32[128,128], index: 5, kind: input, shape index: {}]   ;;  %s2042_s7 = inlined_call_operand.vmem [shape: f32[128,128], index: 7, kind: input, shape index: {}]   ;;  %s2043_s6 = inlined_call_operand.vmem [shape: f32[1,128], index: 6, kind: input, shape index: {}]   ;;  %s2044_s8 = inlined_call_operand.vmem [shape: f32[1,128], index: 8, kind: input, shape index: {}]   ;;  %s2045_s9 = inlined_call_operand.vmem [shape: f32[8,128], index: 9, kind: output, shape index: {}]  }
   0x1   :  { %v59_v0 = vld [vmem:[%s2036_s3 + $0x78] sm:$0xff]  ;;  %v58_v1 = vld [vmem:[%s2036_s3 + $0x70] sm:$0xff]  ;;  %v57_v2 = vld [vmem:[%s2036_s3 + $0x68] sm:$0xff] }
   0x2   :  { %v1199_v3 = vand.u32 4294901760, %v59_v0  ;;  %v1201_v4 = vand.u32 4294901760, %v58_v1  ;;  %v1203_v5 = vand.u32 4294901760, %v57_v2  ;;  %v56_v6 = vld [vmem:[%s2036_s3 + $0x60] sm:$0xff]  ;;  %v55_v7 = vld [vmem:[%s2036_s3 + $0x58] sm:$0xff]  ;;  %v54_v8 = vld [vmem:[%s2036_s3 + $0x50] sm:$0xff] }
   0x3   :  { %v1214_v9 = vand.u32 4294901760, %v56_v6  ;;  %v1216_v10 = vand.u32 4294901760, %v55_v7  ;;  %v1218_v11 = vand.u32 4294901760, %v54_v8  ;;  %v53_v12 = vld [vmem:[%s2036_s3 + $0x48] sm:$0xff]  ;;  %v52_v13 = vld [vmem:[%s2036_s3 + $0x40] sm:$0xff]  ;;  %v51_v21 = vld [vmem:[%s2036_s3 + $0x38] sm:$0xff] }
   0x4   :  { %65 = vmatpush.msra.mxu0 %v1199_v3  ;;  %v1228_v14 = vsub.f32 %v59_v0, %v1199_v3  ;;  %v1231_v15 = vsub.f32 %v58_v1, %v1201_v4  ;;  %v1234_v16 = vsub.f32 %v57_v2, %v1203_v5  ;;  %v1236_v17 = vand.u32 4294901760, %v53_v12  ;;  %261 = vmatpush.msra.mxu3 %v1199_v3  ;;  %v50_v34 = vld [vmem:[%s2036_s3 + $0x30] sm:$0xff]  ;;  %v49_v35 = vld [vmem:[%s2036_s3 + $0x28] sm:$0xff]  ;;  %v48_v42 = vld [vmem:[%s2036_s3 + $0x20] sm:$0xff] }
   0x5   :  { %v1240_v18 = vsub.f32 %v56_v6, %v1214_v9  ;;  %v1243_v19 = vsub.f32 %v55_v7, %v1216_v10  ;;  %v1245_v20 = vand.u32 4294901760, %v52_v13  ;;  %v1255_v25 = vsub.f32 %v54_v8, %v1218_v11  ;;  %v47_v47 = vld [vmem:[%s2036_s3 + $0x18] sm:$0xff]  ;;  %v46_v53 = vld [vmem:[%s2036_s3 + $0x10] sm:$0xff]  ;;  %v1135_v59 = vld [vmem:[%s2037_s1] ss:$0 sm:$0xff] }
   0x6   :  { %67 = vmatpush.msra.mxu0 %v1201_v4  ;;  %v107_v22 = vand.u32 4294901760, %v1228_v14  ;;  %v113_v23 = vand.u32 4294901760, %v1231_v15  ;;  %v119_v24 = vand.u32 4294901760, %v1234_v16  ;;  %208 = vmatpush.msra.mxu2 %v1228_v14  ;;  %v1261_v28 = vsub.f32 %v53_v12, %v1236_v17  ;;  %v45_v62 = vld [vmem:[%s2036_s3 + $0x8] sm:$0xff]  ;;  %v32_v63 = vld [vmem:[%s2040_s0] sm:$0xff] }
   0x7   :  { %v125_v26 = vand.u32 4294901760, %v1240_v18  ;;  %v131_v27 = vand.u32 4294901760, %v1243_v19  ;;  %263 = vmatpush.msra.mxu3 %v1201_v4  ;;  %v1274_v32 = vand.u32 4294901760, %v51_v21  ;;  %v1278_v33 = vsub.f32 %v52_v13, %v1245_v20  ;;  %v1136_v6 = vld [vmem:[%s2038_s2] ss:$0 sm:$0xff] }
   0x8   :  { %v108_v29 = vsub.f32 %v1228_v14, %v107_v22  ;;  %69 = vmatpush.msra.mxu0 %v1203_v5  ;;  %v114_v30 = vsub.f32 %v1231_v15, %v113_v23  ;;  %v120_v31 = vsub.f32 %v1234_v16, %v119_v24  ;;  %211 = vmatpush.msra.mxu2 %v1231_v15  ;;  %v137_v39 = vand.u32 4294901760, %v1255_v25  ;;  %v44_v12 = vld [vmem:[%s2036_s3] sm:$0xff]  ;;  %v421_v14 = vld [vmem:[%s2041_s5 + $0x78] sm:$0xff]  ;;  %v420_v15 = vld [vmem:[%s2041_s5 + $0x70] sm:$0xff] }
   0x9   :  { %265 = vmatpush.msra.mxu3 %v1203_v5  ;;  %v126_v38 = vsub.f32 %v1240_v18, %v125_v26  ;;  %v132_v40 = vsub.f32 %v1243_v19, %v131_v27  ;;  %v143_v41 = vand.u32 4294901760, %v1261_v28  ;;  %v1302_v44 = vand.u32 4294901760, %v50_v34 }
   0xa   :  { %v109_v36 = vand.u32 4294901760, %v108_v29  ;;  %v115_v37 = vand.u32 4294901760, %v114_v30  ;;  %71 = vmatpush.msra.mxu0 %v1214_v9  ;;  %214 = vmatpush.msra.mxu2 %v1234_v16  ;;  %v121_v43 = vand.u32 4294901760, %v120_v31  ;;  %v1305_v45 = vsub.f32 %v51_v21, %v1274_v32  ;;  %v419_v16 = vld [vmem:[%s2041_s5 + $0x68] sm:$0xff] }
   0xb   :  { %267 = vmatpush.msra.mxu3 %v1214_v9  ;;  %v1307_v46 = vand.u32 4294901760, %v49_v35  ;;  %v149_v48 = vand.u32 4294901760, %v1278_v33  ;;  %v127_v49 = vand.u32 4294901760, %v126_v38  ;;  %v138_v50 = vsub.f32 %v1255_v25, %v137_v39 }
   0xc   :  { %110 = vmatpush.msra.mxu1 %v109_v36  ;;  %73 = vmatpush.msra.mxu0 %v1216_v10  ;;  %v1320_v51 = vsub.f32 %v50_v34, %v1302_v44  ;;  %v1322_v52 = vand.u32 4294901760, %v48_v42  ;;  %v144_v54 = vsub.f32 %v1261_v28, %v143_v41  ;;  %v1330_v55 = vand.u32 4294901760, %v47_v47 }
   0xd   :  { %217 = vmatpush.msra.mxu2 %v1240_v18  ;;  %269 = vmatpush.msra.mxu3 %v1216_v10  ;;  %v133_v56 = vand.u32 4294901760, %v132_v40  ;;  %v155_v57 = vand.u32 4294901760, %v1305_v45  ;;  %v1337_v58 = vsub.f32 %v49_v35, %v1307_v46  ;;  %v150_v60 = vsub.f32 %v1278_v33, %v149_v48 }
   0xe   :  { %116 = vmatpush.msra.mxu1 %v115_v37  ;;  %75 = vmatpush.msra.mxu0 %v1218_v11  ;;  %v1345_v61 = vand.u32 4294901760, %v46_v53  ;;  %v139_v0 = vand.u32 4294901760, %v138_v50  ;;  %v161_v1 = vand.u32 4294901760, %v1320_v51  ;;  %v1358_v2 = vsub.f32 %v48_v42, %v1322_v52 }
   0xf   :  { %220 = vmatpush.msra.mxu2 %v1243_v19  ;;  %271 = vmatpush.msra.mxu3 %v1218_v11  ;;  %v145_v7 = vand.u32 4294901760, %v144_v54  ;;  %v1364_v8 = vsub.f32 %v47_v47, %v1330_v55  ;;  %v156_v13 = vsub.f32 %v1305_v45, %v155_v57  ;;  %v167_v21 = vand.u32 4294901760, %v1337_v58 }
  0x10   :  { %122 = vmatpush.msra.mxu1 %v121_v43  ;;  %77 = vmatpush.msra.mxu0 %v1236_v17  ;;  %v1376_v29 = vand.u32 4294901760, %v45_v62  ;;  %v37_v30 = vmul.f32 %v1135_v59, %v32_v63  ;;  %v151_v31 = vand.u32 4294901760, %v150_v60  ;;  %v1379_v34 = vsub.f32 %v46_v53, %v1345_v61 }
  0x11   :  { %223 = vmatpush.msra.mxu2 %v1255_v25  ;;  %273 = vmatpush.msra.mxu3 %v1236_v17  ;;  %v162_v35 = vsub.f32 %v1320_v51, %v161_v1  ;;  %v173_v36 = vand.u32 4294901760, %v1358_v2  ;;  %v1388_v37 = vand.u32 4294901760, %v44_v12  ;;  %v179_v40 = vand.u32 4294901760, %v1364_v8 }
  0x12   :  { %128 = vmatpush.msra.mxu1 %v127_v49  ;;  %79 = vmatpush.msra.mxu0 %v1245_v20  ;;  %v42_v38 = vadd.f32 %v1136_v6, %v37_v30  ;;  %v157_v42 = vand.u32 4294901760, %v156_v13  ;;  %v168_v43 = vsub.f32 %v1337_v58, %v167_v21  ;;  %v1398_v47 = vsub.f32 %v45_v62, %v1376_v29 }
  0x13   :  { %226 = vmatpush.msra.mxu2 %v1261_v28  ;;  %275 = vmatpush.msra.mxu3 %v1245_v20  ;;  %v185_v50 = vand.u32 4294901760, %v1379_v34  ;;  %v163_v53 = vand.u32 4294901760, %v162_v35  ;;  %v174_v54 = vsub.f32 %v1358_v2, %v173_v36  ;;  %v180_v62 = vsub.f32 %v1364_v8, %v179_v40 }
  0x14   :  { %134 = vmatpush.msra.mxu1 %v133_v56  ;;  %81 = vmatpush.msra.mxu0 %v1274_v32  ;;  %v43_v49 = vmax.f32 %v42_v38, 0.0  ;;  %v1408_v56 = vsub.f32 %v44_v12, %v1388_v37  ;;  %v169_v60 = vand.u32 4294901760, %v168_v43  ;;  %v191_v63 = vand.u32 4294901760, %v1398_v47 }
  0x15   :  { %229 = vmatpush.msra.mxu2 %v1278_v33  ;;  %277 = vmatpush.msra.mxu3 %v1274_v32  ;;  %v175_v6 = vand.u32 4294901760, %v174_v54  ;;  %v181_v30 = vand.u32 4294901760, %v180_v62  ;;  %v1462_v18 = vand.u32 4294901760, %v421_v14  ;;  %v414_v62 = vld [vmem:[%s2041_s5 + $0x40] sm:$0xff]  ;;  %v413_v33 = vld [vmem:[%s2041_s5 + $0x38] sm:$0xff] }
  0x16   :  { %140 = vmatpush.msra.mxu1 %v139_v0  ;;  %83 = vmatpush.msra.mxu0 %v1302_v44  ;;  %v1410_v59 = vand.u32 4294901760, %v43_v49  ;;  %v197_v12 = vand.u32 4294901760, %v1408_v56 }
  0x17   :  { %232 = vmatpush.msra.mxu2 %v1305_v45  ;;  %279 = vmatpush.msra.mxu3 %v1302_v44  ;;  %v1565_v45 = vand.u32 4294901760, %v413_v33 }
  0x18   :  { %146 = vmatpush.msra.mxu1 %v145_v7  ;;  %85 = vmatpush.msra.mxu0 %v1307_v46  ;;  %v97_v0 = vsub.f32 %v43_v49, %v1410_v59  ;;  %v186_v7 = vsub.f32 %v1379_v34, %v185_v50 }
  0x19   :  { %235 = vmatpush.msra.mxu2 %v1320_v51  ;;  %281 = vmatpush.msra.mxu3 %v1307_v46 }
  0x1a   :  { %152 = vmatpush.msra.mxu1 %v151_v31  ;;  %87 = vmatpush.msra.mxu0 %v1322_v52  ;;  %v98_v13 = vand.u32 4294901760, %v97_v0  ;;  %v192_v31 = vsub.f32 %v1398_v47, %v191_v63  ;;  %v187_v38 = vand.u32 4294901760, %v186_v7 }
  0x1b   :  { %238 = vmatpush.msra.mxu2 %v1337_v58  ;;  %283 = vmatpush.msra.mxu3 %v1322_v52 }
  0x1c   :  { %158 = vmatpush.msra.mxu1 %v157_v42  ;;  %89 = vmatpush.msra.mxu0 %v1330_v55  ;;  %v99_v35 = vsub.f32 %v97_v0, %v98_v13  ;;  %v198_v42 = vsub.f32 %v1408_v56, %v197_v12  ;;  %v193_v43 = vand.u32 4294901760, %v192_v31 }
  0x1d   :  { %241 = vmatpush.msra.mxu2 %v1358_v2  ;;  %285 = vmatpush.msra.mxu3 %v1330_v55 }
  0x1e   :  { %164 = vmatpush.msra.mxu1 %v163_v53  ;;  %91 = vmatpush.msra.mxu0 %v1345_v61  ;;  %v100_v49 = vand.u32 4294901760, %v99_v35  ;;  %v199_v53 = vand.u32 4294901760, %v198_v42  ;;  %v1517_v35 = vand.u32 4294901760, %v414_v62 }
  0x1f   :  { %244 = vmatpush.msra.mxu2 %v1364_v8  ;;  %287 = vmatpush.msra.mxu3 %v1345_v61 }
  0x20   :  { %170 = vmatpush.msra.mxu1 %v169_v60  ;;  %93 = vmatpush.msra.mxu0 %v1376_v29  ;;  %v415_v60 = vld [vmem:[%s2041_s5 + $0x48] sm:$0xff] }
  0x21   :  { %247 = vmatpush.msra.mxu2 %v1379_v34  ;;  %289 = vmatpush.msra.mxu3 %v1376_v29 }
  0x22   :  { %176 = vmatpush.msra.mxu1 %v175_v6  ;;  %95 = vmatpush.msra.mxu0 %v1388_v37 }
  0x23   :  { %250 = vmatpush.msra.mxu2 %v1398_v47  ;;  %291 = vmatpush.msra.mxu3 %v1388_v37 }
  0x24   :  { %302 = vmatpush.msrb.mxu0 %v107_v22  ;;  %182 = vmatpush.msra.mxu1 %v181_v30  ;;  %v1464_v22 = vand.u32 4294901760, %v420_v15 }
  0x25   :  { %253 = vmatpush.msra.mxu2 %v1408_v56  ;;  %295 = vmatmul.f32.vlgmr.msra.gmra.mxu3 %v98_v13  ;;  %v1502_v13 = vand.u32 4294901760, %v415_v60 }
  0x26   :  { %306 = vmatpush.msrb.mxu0 %v113_v23  ;;  %188 = vmatpush.msra.mxu1 %v187_v38  ;;  %v1466_v23 = vand.u32 4294901760, %v419_v16  ;;  %v1497_v6 = vsub.f32 %v420_v15, %v1464_v22 }
  0x27   :  { %256 = vmatmul.f32.vlgmr.msra.gmra.mxu2 %v97_v0  ;;  %101 = vmatmul.f32.vlgmr.msra.gmra.mxu0 %v100_v49  ;;  %v1494_v0 = vsub.f32 %v421_v14, %v1462_v18  ;;  %v411_v14 = vld [vmem:[%s2041_s5 + $0x28] sm:$0xff] }
  0x28   :  { %310 = vmatpush.msrb.mxu0 %v119_v24  ;;  %194 = vmatpush.msra.mxu1 %v193_v43  ;;  %v418_v24 = vld [vmem:[%s2041_s5 + $0x60] sm:$0xff]  ;;  %v1500_v7 = vsub.f32 %v419_v16, %v1466_v23 }
  0x29   :  { %v1478_v19 = vand.u32 4294901760, %v418_v24  ;;  %427 = vmatpush.msrb.mxu2 %v1462_v18  ;;  %v469_v25 = vand.u32 4294901760, %v1494_v0 }
  0x2a   :  { %314 = vmatpush.msrb.mxu0 %v125_v26  ;;  %200 = vmatpush.msra.mxu1 %v199_v53  ;;  %v417_v26 = vld [vmem:[%s2041_s5 + $0x58] sm:$0xff]  ;;  %v481_v31 = vand.u32 4294901760, %v1500_v7  ;;  %v1551_v53 = vsub.f32 %v414_v62, %v1517_v35 }
  0x2b   :  { %202 = vmatmul.f32.vlgmr.msra.gmra.mxu1 %v1410_v59  ;;  %v1505_v30 = vsub.f32 %v418_v24, %v1478_v19  ;;  %429 = vmatpush.msrb.mxu2 %v1464_v22  ;;  %v409_v62 = vld [vmem:[%s2041_s5 + $0x18] sm:$0xff] }
  0x2c   :  { %369 = vmatpush.msrb.mxu1 %v1199_v3  ;;  %318 = vmatpush.msrb.mxu0 %v131_v27  ;;  %v416_v3 = vld [vmem:[%s2041_s5 + $0x50] sm:$0xff]  ;;  %v1480_v27 = vand.u32 4294901760, %v417_v26  ;;  %v482_v43 = vsub.f32 %v1500_v7, %v481_v31  ;;  %v511_v51 = vand.u32 4294901760, %v1551_v53 }
  0x2d   :  { %v1482_v54 = vand.u32 4294901760, %v416_v3  ;;  %v487_v38 = vand.u32 4294901760, %v1505_v30  ;;  %431 = vmatpush.msrb.mxu2 %v1466_v23 }
  0x2e   :  { %371 = vmatpush.msrb.mxu1 %v1201_v4  ;;  %322 = vmatpush.msrb.mxu0 %v137_v39  ;;  %v1509_v4 = vsub.f32 %v417_v26, %v1480_v27  ;;  %v475_v39 = vand.u32 4294901760, %v1497_v6  ;;  %v410_v26 = vld [vmem:[%s2041_s5 + $0x20] sm:$0xff]  ;;  %v512_v2 = vsub.f32 %v1551_v53, %v511_v51 }
  0x2f   :  { %v1522_v42 = vsub.f32 %v416_v3, %v1482_v54  ;;  %v488_v16 = vsub.f32 %v1505_v30, %v487_v38  ;;  %433 = vmatpush.msrb.mxu2 %v1478_v19  ;;  %v483_v3 = vand.u32 4294901760, %v482_v43  ;;  %v1595_v58 = vand.u32 4294901760, %v410_v26  ;;  %v408_v43 = vld [vmem:[%s2041_s5 + $0x10] sm:$0xff] }
  0x30   :  { %373 = vmatpush.msrb.mxu1 %v1203_v5  ;;  %326 = vmatpush.msrb.mxu0 %v143_v41  ;;  %v470_v5 = vsub.f32 %v1494_v0, %v469_v25  ;;  %v476_v28 = vsub.f32 %v1497_v6, %v475_v39  ;;  %v1534_v41 = vsub.f32 %v415_v60, %v1502_v13  ;;  %v513_v34 = vand.u32 4294901760, %v512_v2 }
  0x31   :  { %v499_v24 = vand.u32 4294901760, %v1522_v42  ;;  %435 = vmatpush.msrb.mxu2 %v1480_v27 }
  0x32   :  { %375 = vmatpush.msrb.mxu1 %v1214_v9  ;;  %330 = vmatpush.msrb.mxu0 %v149_v48  ;;  %v493_v9 = vand.u32 4294901760, %v1509_v4  ;;  %v412_v48 = vld [vmem:[%s2041_s5 + $0x30] sm:$0xff]  ;;  %v471_v49 = vand.u32 4294901760, %v470_v5  ;;  %v477_v15 = vand.u32 4294901760, %v476_v28  ;;  %v489_v5 = vand.u32 4294901760, %v488_v16 }
  0x33   :  { %v500_v28 = vsub.f32 %v1522_v42, %v499_v24  ;;  %437 = vmatpush.msrb.mxu2 %v1482_v54  ;;  %v1625_v16 = vsub.f32 %v410_v26, %v1595_v58 }
  0x34   :  { %377 = vmatpush.msrb.mxu1 %v1216_v10  ;;  %334 = vmatpush.msrb.mxu0 %v155_v57  ;;  %v505_v10 = vand.u32 4294901760, %v1534_v41  ;;  %v1567_v57 = vand.u32 4294901760, %v412_v48  ;;  %v494_v60 = vsub.f32 %v1509_v4, %v493_v9 }
  0x35   :  { %472 = vmatpush.msrb.mxu3 %v471_v49  ;;  %439 = vmatpush.msrb.mxu2 %v1502_v13 }
  0x36   :  { %379 = vmatpush.msrb.mxu1 %v1218_v11  ;;  %338 = vmatpush.msrb.mxu0 %v161_v1  ;;  %v1576_v11 = vand.u32 4294901760, %v411_v14  ;;  %v1583_v1 = vsub.f32 %v413_v33, %v1565_v45  ;;  %v495_v33 = vand.u32 4294901760, %v494_v60 }
  0x37   :  { %478 = vmatpush.msrb.mxu3 %v477_v15  ;;  %v501_v15 = vand.u32 4294901760, %v500_v28  ;;  %441 = vmatpush.msrb.mxu2 %v1517_v35 }
  0x38   :  { %381 = vmatpush.msrb.mxu1 %v1236_v17  ;;  %342 = vmatpush.msrb.mxu0 %v167_v21  ;;  %v1593_v17 = vsub.f32 %v412_v48, %v1567_v57  ;;  %v506_v21 = vsub.f32 %v1534_v41, %v505_v10  ;;  %v517_v48 = vand.u32 4294901760, %v1583_v1  ;;  %v1609_v49 = vsub.f32 %v411_v14, %v1576_v11 }
  0x39   :  { %484 = vmatpush.msrb.mxu3 %v483_v3  ;;  %443 = vmatpush.msrb.mxu2 %v1565_v45 }
  0x3a   :  { %383 = vmatpush.msrb.mxu1 %v1245_v20  ;;  %346 = vmatpush.msrb.mxu0 %v173_v36  ;;  %v1611_v20 = vand.u32 4294901760, %v409_v62  ;;  %v407_v36 = vld [vmem:[%s2041_s5 + $0x8] sm:$0xff]  ;;  %v523_v14 = vand.u32 4294901760, %v1593_v17  ;;  %v507_v8 = vand.u32 4294901760, %v506_v21  ;;  %v518_v3 = vsub.f32 %v1583_v1, %v517_v48 }
  0x3b   :  { %490 = vmatpush.msrb.mxu3 %v489_v5  ;;  %v529_v26 = vand.u32 4294901760, %v1609_v49  ;;  %v535_v5 = vand.u32 4294901760, %v1625_v16  ;;  %445 = vmatpush.msrb.mxu2 %v1567_v57 }
  0x3c   :  { %385 = vmatpush.msrb.mxu1 %v1274_v32  ;;  %350 = vmatpush.msrb.mxu0 %v179_v40  ;;  %v1627_v32 = vand.u32 4294901760, %v408_v43  ;;  %v406_v40 = vld [vmem:[%s2041_s5] sm:$0xff]  ;;  %v1641_v60 = vsub.f32 %v409_v62, %v1611_v20 }
  0x3d   :  { %496 = vmatpush.msrb.mxu3 %v495_v33  ;;  %v1656_v28 = vand.u32 4294901760, %v406_v40  ;;  %v530_v47 = vsub.f32 %v1609_v49, %v529_v26  ;;  %v536_v56 = vsub.f32 %v1625_v16, %v535_v5  ;;  %447 = vmatpush.msrb.mxu2 %v1576_v11 }
  0x3e   :  { %387 = vmatpush.msrb.mxu1 %v1302_v44  ;;  %354 = vmatpush.msrb.mxu0 %v185_v50  ;;  %v1643_v44 = vand.u32 4294901760, %v407_v36  ;;  %v524_v50 = vsub.f32 %v1593_v17, %v523_v14  ;;  %v1654_v62 = vsub.f32 %v408_v43, %v1627_v32 }
  0x3f   :  { %502 = vmatpush.msrb.mxu3 %v501_v15  ;;  %v1677_v43 = vsub.f32 %v406_v40, %v1656_v28  ;;  %449 = vmatpush.msrb.mxu2 %v1595_v58 }
  0x40   :  { %389 = vmatpush.msrb.mxu1 %v1307_v46  ;;  %358 = vmatpush.msrb.mxu0 %v191_v63  ;;  %v519_v46 = vand.u32 4294901760, %v518_v3  ;;  %v541_v63 = vand.u32 4294901760, %v1641_v60  ;;  %v1667_v21 = vsub.f32 %v407_v36, %v1643_v44  ;;  %v537_v36 = vand.u32 4294901760, %v536_v56 }
  0x41   :  { %508 = vmatpush.msrb.mxu3 %v507_v8  ;;  %v559_v15 = vand.u32 4294901760, %v1677_v43  ;;  %451 = vmatpush.msrb.mxu2 %v1611_v20 }
  0x42   :  { %391 = vmatpush.msrb.mxu1 %v1322_v52  ;;  %362 = vmatpush.msrb.mxu0 %v197_v12  ;;  %v525_v52 = vand.u32 4294901760, %v524_v50  ;;  %v547_v12 = vand.u32 4294901760, %v1654_v62  ;;  %v542_v33 = vsub.f32 %v1641_v60, %v541_v63  ;;  %v553_v2 = vand.u32 4294901760, %v1667_v21 }
  0x43   :  { %364 = vmatmul.f32.vlgmr.msrb.gmra.mxu0 %v1410_v59  ;;  %514 = vmatpush.msrb.mxu3 %v513_v34 }
  0x44   :  { %393 = vmatpush.msrb.mxu1 %v1330_v55  ;;  %570 = vmatpush.msra.mxu0 %v1494_v0  ;;  %v531_v55 = vand.u32 4294901760, %v530_v47  ;;  %v554_v8 = vsub.f32 %v1667_v21, %v553_v2  ;;  %v774_v47 = vld [vmem:[%s2042_s7 + $0x30] sm:$0xff] }
  0x45   :  { %520 = vmatpush.msrb.mxu3 %v519_v46  ;;  %453 = vmatpush.msrb.mxu2 %v1627_v32  ;;  %v775_v46 = vld [vmem:[%s2042_s7 + $0x38] sm:$0xff] }
  0x46   :  { %395 = vmatpush.msrb.mxu1 %v1345_v61  ;;  %573 = vmatpush.msra.mxu0 %v1497_v6  ;;  %v548_v61 = vsub.f32 %v1654_v62, %v547_v12 }
  0x47   :  { %526 = vmatpush.msrb.mxu3 %v525_v52  ;;  %455 = vmatpush.msrb.mxu2 %v1643_v44 }
  0x48   :  { %397 = vmatpush.msrb.mxu1 %v1376_v29  ;;  %576 = vmatpush.msra.mxu0 %v1500_v7  ;;  %v543_v29 = vand.u32 4294901760, %v542_v33  ;;  %v549_v40 = vand.u32 4294901760, %v548_v61  ;;  %v783_v7 = vld [vmem:[%s2042_s7 + $0x78] sm:$0xff]  ;;  %v772_v33 = vld [vmem:[%s2042_s7 + $0x20] sm:$0xff]  ;;  %v1887_v61 = vand.u32 4294901760, %v775_v46 }
  0x49   :  { %532 = vmatpush.msrb.mxu3 %v531_v55  ;;  %457 = vmatpush.msrb.mxu2 %v1656_v28 }
  0x4a   :  { %399 = vmatpush.msrb.mxu1 %v1388_v37  ;;  %579 = vmatpush.msra.mxu0 %v1505_v30  ;;  %v560_v37 = vsub.f32 %v1677_v43, %v559_v15  ;;  %v781_v30 = vld [vmem:[%s2042_s7 + $0x68] sm:$0xff] }
  0x4b   :  { %401 = vmatmul.f32.vlgmr.msrb.gmra.mxu1 %v1410_v59  ;;  %538 = vmatpush.msrb.mxu3 %v537_v36  ;;  %v555_v59 = vand.u32 4294901760, %v554_v8 }
  0x4c   :  { %623 = vmatpush.msra.mxu1 %v1462_v18  ;;  %582 = vmatpush.msra.mxu0 %v1509_v4  ;;  %v561_v3 = vand.u32 4294901760, %v560_v37  ;;  %v1793_v4 = vand.u32 4294901760, %v783_v7 }
  0x4d   :  { %544 = vmatpush.msrb.mxu3 %v543_v29  ;;  %664 = vmatpush.msra.mxu2 %v469_v25 }
  0x4e   :  { %625 = vmatpush.msra.mxu1 %v1464_v22  ;;  %585 = vmatpush.msra.mxu0 %v1522_v42 }
  0x4f   :  { %550 = vmatpush.msrb.mxu3 %v549_v40  ;;  %668 = vmatpush.msra.mxu2 %v475_v39  ;;  %v1797_v39 = vand.u32 4294901760, %v781_v30 }
  0x50   :  { %627 = vmatpush.msra.mxu1 %v1466_v23  ;;  %588 = vmatpush.msra.mxu0 %v1534_v41 }
  0x51   :  { %556 = vmatpush.msrb.mxu3 %v555_v59  ;;  %672 = vmatpush.msra.mxu2 %v481_v31  ;;  %v780_v31 = vld [vmem:[%s2042_s7 + $0x60] sm:$0xff]  ;;  %v771_v59 = vld [vmem:[%s2042_s7 + $0x18] sm:$0xff] }
  0x52   :  { %629 = vmatpush.msra.mxu1 %v1478_v19  ;;  %591 = vmatpush.msra.mxu0 %v1551_v53  ;;  %v1808_v41 = vand.u32 4294901760, %v780_v31 }
  0x53   :  { %562 = vmatpush.msrb.mxu3 %v561_v3  ;;  %676 = vmatpush.msra.mxu2 %v487_v38  ;;  %v778_v38 = vld [vmem:[%s2042_s7 + $0x50] sm:$0xff] }
  0x54   :  { %631 = vmatpush.msra.mxu1 %v1480_v27  ;;  %594 = vmatpush.msra.mxu0 %v1583_v1  ;;  %v1812_v53 = vand.u32 4294901760, %v778_v38 }
  0x55   :  { %731 = vmatpush.msra.mxu3 %v1462_v18  ;;  %680 = vmatpush.msra.mxu2 %v493_v9  ;;  %v1137_v18 = vld [vmem:[%s2039_s4] ss:$0 sm:$0xff] }
  0x56   :  { %633 = vmatpush.msra.mxu1 %v1482_v54  ;;  %597 = vmatpush.msra.mxu0 %v1593_v17  ;;  %v1833_v17 = vsub.f32 %v780_v31, %v1808_v41 }
  0x57   :  { %733 = vmatpush.msra.mxu3 %v1464_v22  ;;  %684 = vmatpush.msra.mxu2 %v499_v24  ;;  %v777_v24 = vld [vmem:[%s2042_s7 + $0x48] sm:$0xff] }
  0x58   :  { %635 = vmatpush.msra.mxu1 %v1502_v13  ;;  %600 = vmatpush.msra.mxu0 %v1609_v49  ;;  %v1830_v1 = vand.u32 4294901760, %v777_v24 }
  0x59   :  { %735 = vmatpush.msra.mxu3 %v1466_v23  ;;  %688 = vmatpush.msra.mxu2 %v505_v10  ;;  %v776_v10 = vld [vmem:[%s2042_s7 + $0x40] sm:$0xff] }
  0x5a   :  { %637 = vmatpush.msra.mxu1 %v1517_v35  ;;  %603 = vmatpush.msra.mxu0 %v1625_v16  ;;  %v1841_v49 = vand.u32 4294901760, %v776_v10 }
  0x5b   :  { %737 = vmatpush.msra.mxu3 %v1478_v19  ;;  %692 = vmatpush.msra.mxu2 %v511_v51  ;;  %v1827_v51 = vsub.f32 %v781_v30, %v1797_v39 }
  0x5c   :  { %639 = vmatpush.msra.mxu1 %v1565_v45  ;;  %606 = vmatpush.msra.mxu0 %v1641_v60  ;;  %v1849_v60 = vsub.f32 %v777_v24, %v1830_v1 }
  0x5d   :  { %739 = vmatpush.msra.mxu3 %v1480_v27  ;;  %696 = vmatpush.msra.mxu2 %v517_v48  ;;  %v1839_v48 = vsub.f32 %v778_v38, %v1812_v53  ;;  %v843_v16 = vand.u32 4294901760, %v1827_v51 }
  0x5e   :  { %641 = vmatpush.msra.mxu1 %v1567_v57  ;;  %609 = vmatpush.msra.mxu0 %v1654_v62  ;;  %v867_v55 = vand.u32 4294901760, %v1849_v60 }
  0x5f   :  { %741 = vmatpush.msra.mxu3 %v1482_v54  ;;  %700 = vmatpush.msra.mxu2 %v523_v14  ;;  %v844_v50 = vsub.f32 %v1827_v51, %v843_v16  ;;  %v861_v62 = vand.u32 4294901760, %v1839_v48 }
  0x60   :  { %643 = vmatpush.msra.mxu1 %v1576_v11  ;;  %612 = vmatpush.msra.mxu0 %v1667_v21 }
  0x61   :  { %743 = vmatpush.msra.mxu3 %v1502_v13  ;;  %704 = vmatpush.msra.mxu2 %v529_v26  ;;  %v782_v13 = vld [vmem:[%s2042_s7 + $0x70] sm:$0xff]  ;;  %v849_v26 = vand.u32 4294901760, %v1833_v17  ;;  %v862_v8 = vsub.f32 %v1839_v48, %v861_v62 }
  0x62   :  { %645 = vmatpush.msra.mxu1 %v1595_v58  ;;  %615 = vmatpush.msra.mxu0 %v1677_v43  ;;  %v1795_v25 = vand.u32 4294901760, %v782_v13 }
  0x63   :  { %745 = vmatpush.msra.mxu3 %v1517_v35  ;;  %708 = vmatpush.msra.mxu2 %v535_v5  ;;  %v779_v35 = vld [vmem:[%s2042_s7 + $0x58] sm:$0xff]  ;;  %v850_v56 = vsub.f32 %v1833_v17, %v849_v26  ;;  %v863_v30 = vand.u32 4294901760, %v862_v8 }
  0x64   :  { %647 = vmatpush.msra.mxu1 %v1611_v20  ;;  %v1810_v9 = vand.u32 4294901760, %v779_v35  ;;  %789 = vmatpush.msrb.mxu0 %v1793_v4 }
  0x65   :  { %747 = vmatpush.msra.mxu3 %v1565_v45  ;;  %712 = vmatpush.msra.mxu2 %v541_v63  ;;  %v851_v3 = vand.u32 4294901760, %v850_v56 }
  0x66   :  { %649 = vmatpush.msra.mxu1 %v1627_v32  ;;  %791 = vmatpush.msrb.mxu0 %v1795_v25 }
  0x67   :  { %749 = vmatpush.msra.mxu3 %v1567_v57  ;;  %716 = vmatpush.msra.mxu2 %v547_v12  ;;  %v1821_v57 = vsub.f32 %v783_v7, %v1793_v4  ;;  %v773_v12 = vld [vmem:[%s2042_s7 + $0x28] sm:$0xff]  ;;  %v1917_v7 = vand.u32 4294901760, %v771_v59 }
  0x68   :  { %651 = vmatpush.msra.mxu1 %v1643_v44  ;;  %793 = vmatpush.msrb.mxu0 %v1797_v39  ;;  %v1895_v37 = vand.u32 4294901760, %v773_v12 }
  0x69   :  { %751 = vmatpush.msra.mxu3 %v1576_v11  ;;  %720 = vmatpush.msra.mxu2 %v553_v2  ;;  %v1824_v11 = vsub.f32 %v782_v13, %v1795_v25  ;;  %v845_v2 = vand.u32 4294901760, %v844_v50 }
  0x6a   :  { %653 = vmatpush.msra.mxu1 %v1656_v28  ;;  %795 = vmatpush.msrb.mxu0 %v1808_v41 }
  0x6b   :  { %753 = vmatpush.msra.mxu3 %v1595_v58  ;;  %724 = vmatpush.msra.mxu2 %v559_v15  ;;  %v1836_v58 = vsub.f32 %v779_v35, %v1810_v9  ;;  %v837_v14 = vand.u32 4294901760, %v1824_v11  ;;  %v1889_v15 = vand.u32 4294901760, %v774_v47 }
  0x6c   :  { %797 = vmatpush.msrb.mxu0 %v1810_v9 }
  0x6d   :  { %755 = vmatpush.msra.mxu3 %v1611_v20  ;;  %v831_v20 = vand.u32 4294901760, %v1821_v57  ;;  %v838_v34 = vsub.f32 %v1824_v11, %v837_v14  ;;  %v855_v5 = vand.u32 4294901760, %v1836_v58 }
  0x6e   :  { %799 = vmatpush.msrb.mxu0 %v1812_v53 }
  0x6f   :  { %757 = vmatpush.msra.mxu3 %v1627_v32  ;;  %v839_v52 = vand.u32 4294901760, %v838_v34  ;;  %v856_v36 = vsub.f32 %v1836_v58, %v855_v5 }
  0x70   :  { %801 = vmatpush.msrb.mxu0 %v1830_v1 }
  0x71   :  { %759 = vmatpush.msra.mxu3 %v1643_v44  ;;  %v832_v44 = vsub.f32 %v1821_v57, %v831_v20 }
  0x72   :  { %803 = vmatpush.msrb.mxu0 %v1841_v49 }
  0x73   :  { %761 = vmatpush.msra.mxu3 %v1656_v28  ;;  %v1864_v28 = vsub.f32 %v776_v10, %v1841_v49  ;;  %v833_v21 = vand.u32 4294901760, %v832_v44 }
  0x74   :  { %805 = vmatpush.msrb.mxu0 %v1887_v61 }
  0x75   :  { %834 = vmatpush.msrb.mxu1 %v833_v21  ;;  %v873_v40 = vand.u32 4294901760, %v1864_v28 }
  0x76   :  { %807 = vmatpush.msrb.mxu0 %v1889_v15 }
  0x77   :  { %840 = vmatpush.msrb.mxu1 %v839_v52  ;;  %v874_v31 = vsub.f32 %v1864_v28, %v873_v40 }
  0x78   :  { %809 = vmatpush.msrb.mxu0 %v1895_v37 }
  0x79   :  { %846 = vmatpush.msrb.mxu1 %v845_v2  ;;  %v875_v34 = vand.u32 4294901760, %v874_v31 }
  0x7b   :  { %852 = vmatpush.msrb.mxu1 %v851_v3 }
  0xa4   :  { %v102_v22 = vpop.f32.mrf.mxu0 }
  0xa5   :  { %v103_v23 = vadd.f32 %v1137_v18, %v102_v22  ;;  %v1901_v18 = vsub.f32 %v775_v46, %v1887_v61  ;;  %v1905_v22 = vsub.f32 %v774_v47, %v1889_v15 }
  0xa7   :  { %v885_v35 = vand.u32 4294901760, %v1905_v22 }
  0xa8   :  { %v203_v19 = vpop.f32.mrf.mxu1  ;;  %v296_v6 = vpop.f32.mrf.mxu3 }
  0xa9   :  { %v204_v27 = vadd.f32 %v203_v19, %v103_v23  ;;  %v1907_v23 = vand.u32 4294901760, %v772_v33  ;;  %v886_v50 = vsub.f32 %v1905_v22, %v885_v35 }
  0xaa   :  { %v257_v54 = vpop.f32.mrf.mxu2 }
  0xab   :  { %v258_v0 = vadd.f32 %v257_v54, %v204_v27  ;;  %v868_v27 = vsub.f32 %v1849_v60, %v867_v55  ;;  %v857_v54 = vand.u32 4294901760, %v856_v36  ;;  %v1925_v38 = vsub.f32 %v772_v33, %v1907_v23  ;;  %811 = vmatpush.msrb.mxu0 %v1907_v23 }
  0xac   :  { %v887_v56 = vand.u32 4294901760, %v886_v50 }
  0xad   :  { %v297_v42 = vadd.f32 %v296_v6, %v258_v0  ;;  %v879_v0 = vand.u32 4294901760, %v1901_v18  ;;  %v1915_v6 = vsub.f32 %v773_v12, %v1895_v37  ;;  %858 = vmatpush.msrb.mxu1 %v857_v54  ;;  %v869_v24 = vand.u32 4294901760, %v868_v27  ;;  %813 = vmatpush.msrb.mxu0 %v1917_v7  ;;  %v768_v27 = vld [vmem:[%s2042_s7] sm:$0xff] }
  0xae   :  { %v897_v46 = vand.u32 4294901760, %v1925_v38 }
  0xaf   :  { %v880_v10 = vsub.f32 %v1901_v18, %v879_v0  ;;  %864 = vmatpush.msrb.mxu1 %v863_v30  ;;  %v818_v30 = vand.u32 4294901760, %v768_v27 }
  0xb0   :  { %v898_v12 = vsub.f32 %v1925_v38, %v897_v46 }
  0xb1   :  { %870 = vmatpush.msrb.mxu1 %v869_v24  ;;  %v920_v24 = vsub.f32 %v768_v27, %v818_v30 }
  0xb2   :  { %v899_v2 = vand.u32 4294901760, %v898_v12 }
  0xb3   :  { %876 = vmatpush.msrb.mxu1 %v875_v34  ;;  %v921_v34 = vand.u32 4294901760, %v920_v24 }
  0xc0   :  { %v365_v45 = vpop.f32.mrf.mxu0 }
  0xc1   :  { %v366_v32 = vadd.f32 %v365_v45, %v297_v42  ;;  %v891_v45 = vand.u32 4294901760, %v1915_v6 }
  0xc3   :  { %v892_v21 = vsub.f32 %v1915_v6, %v891_v45 }
  0xc8   :  { %v402_v63 = vpop.f32.mrf.mxu1 }
  0xc9   :  { %v403_v43 = vadd.f32 %v402_v63, %v366_v32  ;;  %v1934_v32 = vsub.f32 %v771_v59, %v1917_v7  ;;  %v881_v63 = vand.u32 4294901760, %v880_v10  ;;  %v769_v59 = vld [vmem:[%s2042_s7 + $0x8] sm:$0xff] }
  0xcb   :  { %v405_v29 = vmax.f32 %v403_v43, 0.0  ;;  %v903_v52 = vand.u32 4294901760, %v1934_v32  ;;  %882 = vmatpush.msrb.mxu1 %v881_v63  ;;  %v893_v43 = vand.u32 4294901760, %v892_v21 }
  0xcd   :  { %v458_v19 = vand.u32 4294901760, %v405_v29  ;;  %v904_v33 = vsub.f32 %v1934_v32, %v903_v52  ;;  %888 = vmatpush.msrb.mxu1 %v887_v56 }
  0xcf   :  { %v459_v13 = vsub.f32 %v405_v29, %v458_v19  ;;  %564 = vmatmul.f32.vlgmr.msrb.gmra.mxu3 %v458_v19  ;;  %894 = vmatpush.msrb.mxu1 %v893_v43  ;;  %v905_v36 = vand.u32 4294901760, %v904_v33  ;;  %v770_v29 = vld [vmem:[%s2042_s7 + $0x10] sm:$0xff] }
  0xd0   :  { %985 = vmatpush.msrb.mxu3 %v1793_v4  ;;  %v814_v8 = vand.u32 4294901760, %v770_v29 }
  0xd1   :  { %618 = vmatmul.f32.vlgmr.msra.gmra.mxu0 %v459_v13  ;;  %v460_v42 = vand.u32 4294901760, %v459_v13  ;;  %900 = vmatpush.msrb.mxu1 %v899_v2 }
  0xd2   :  { %987 = vmatpush.msrb.mxu3 %v1795_v25  ;;  %v908_v3 = vsub.f32 %v770_v29, %v814_v8  ;;  %815 = vmatpush.msrb.mxu0 %v814_v8 }
  0xd3   :  { %657 = vmatmul.f32.vlgmr.msra.gmra.mxu1 %v460_v42  ;;  %v461_v44 = vsub.f32 %v459_v13, %v460_v42 }
  0xd4   :  { %989 = vmatpush.msrb.mxu3 %v1797_v39  ;;  %906 = vmatpush.msrb.mxu1 %v905_v36  ;;  %v909_v54 = vand.u32 4294901760, %v908_v3 }
  0xd5   :  { %v462_v47 = vand.u32 4294901760, %v461_v44 }
  0xd6   :  { %991 = vmatpush.msrb.mxu3 %v1808_v41  ;;  %v910_v31 = vsub.f32 %v908_v3, %v909_v54 }
  0xd7   :  { %463 = vmatmul.f32.vlgmr.msrb.gmra.mxu2 %v462_v47  ;;  %763 = vmatmul.f32.vlgmr.msra.gmra.mxu3 %v458_v19  ;;  %v922_v47 = vsub.f32 %v920_v24, %v921_v34 }
  0xd8   :  { %932 = vmatpush.msrb.mxu2 %v1821_v57  ;;  %993 = vmatpush.msrb.mxu3 %v1810_v9  ;;  %v911_v10 = vand.u32 4294901760, %v910_v31 }
  0xd9   :  { %v923_v63 = vand.u32 4294901760, %v922_v47 }
  0xda   :  { %935 = vmatpush.msrb.mxu2 %v1824_v11  ;;  %995 = vmatpush.msrb.mxu3 %v1812_v53 }
  0xdb   :  { %912 = vmatpush.msrb.mxu1 %v911_v10 }
  0xdc   :  { %938 = vmatpush.msrb.mxu2 %v1827_v51  ;;  %997 = vmatpush.msrb.mxu3 %v1830_v1 }
  0xde   :  { %941 = vmatpush.msrb.mxu2 %v1833_v17  ;;  %999 = vmatpush.msrb.mxu3 %v1841_v49 }
  0xdf   :  { %726 = vmatmul.f32.vlgmr.msra.gmra.mxu2 %v458_v19  ;;  %v816_v19 = vand.u32 4294901760, %v769_v59 }
  0xe0   :  { %944 = vmatpush.msrb.mxu2 %v1836_v58  ;;  %1001 = vmatpush.msrb.mxu3 %v1887_v61 }
  0xe1   :  { %v914_v13 = vsub.f32 %v769_v59, %v816_v19  ;;  %817 = vmatpush.msrb.mxu0 %v816_v19 }
  0xe2   :  { %947 = vmatpush.msrb.mxu2 %v1839_v48  ;;  %1003 = vmatpush.msrb.mxu3 %v1889_v15 }
  0xe3   :  { %v915_v42 = vand.u32 4294901760, %v914_v13  ;;  %819 = vmatpush.msrb.mxu0 %v818_v30 }
  0xe4   :  { %950 = vmatpush.msrb.mxu2 %v1849_v60  ;;  %1005 = vmatpush.msrb.mxu3 %v1895_v37 }
  0xe5   :  { %1026 = vmatpush.msra.mxu0 %v831_v20  ;;  %v916_v44 = vsub.f32 %v914_v13, %v915_v42 }
  0xe6   :  { %953 = vmatpush.msrb.mxu2 %v1864_v28  ;;  %1007 = vmatpush.msrb.mxu3 %v1907_v23 }
  0xe7   :  { %1030 = vmatpush.msra.mxu0 %v837_v14  ;;  %v917_v50 = vand.u32 4294901760, %v916_v44 }
  0xe8   :  { %956 = vmatpush.msrb.mxu2 %v1901_v18  ;;  %1009 = vmatpush.msrb.mxu3 %v1917_v7 }
  0xe9   :  { %1034 = vmatpush.msra.mxu0 %v843_v16  ;;  %918 = vmatpush.msrb.mxu1 %v917_v50 }
  0xea   :  { %959 = vmatpush.msrb.mxu2 %v1905_v22  ;;  %1011 = vmatpush.msrb.mxu3 %v814_v8 }
  0xeb   :  { %1038 = vmatpush.msra.mxu0 %v849_v26  ;;  %924 = vmatpush.msrb.mxu1 %v923_v63 }
  0xec   :  { %962 = vmatpush.msrb.mxu2 %v1915_v6  ;;  %1013 = vmatpush.msrb.mxu3 %v816_v19 }
  0xed   :  { %1093 = vmatpush.msra.mxu1 %v1793_v4  ;;  %1042 = vmatpush.msra.mxu0 %v855_v5  ;;  %v1138_v4 = vld [vmem:[%s2043_s6] ss:$0 sm:$0xff] }
  0xee   :  { %965 = vmatpush.msrb.mxu2 %v1925_v38  ;;  %1015 = vmatpush.msrb.mxu3 %v818_v30  ;;  %v1139_v5 = vld [vmem:[%s2044_s8] ss:$0 sm:$0xff] }
  0xef   :  { %1095 = vmatpush.msra.mxu1 %v1795_v25  ;;  %1046 = vmatpush.msra.mxu0 %v861_v62 }
  0xf0   :  { %968 = vmatpush.msrb.mxu2 %v1934_v32 }
  0xf1   :  { %1097 = vmatpush.msra.mxu1 %v1797_v39  ;;  %1050 = vmatpush.msra.mxu0 %v867_v55 }
  0xf2   :  { %971 = vmatpush.msrb.mxu2 %v908_v3 }
  0xf3   :  { %1099 = vmatpush.msra.mxu1 %v1808_v41  ;;  %1054 = vmatpush.msra.mxu0 %v873_v40 }
  0xf4   :  { %974 = vmatpush.msrb.mxu2 %v914_v13 }
  0xf5   :  { %1101 = vmatpush.msra.mxu1 %v1810_v9  ;;  %1058 = vmatpush.msra.mxu0 %v879_v0 }
  0xf6   :  { %977 = vmatpush.msrb.mxu2 %v920_v24 }
  0xf7   :  { %1103 = vmatpush.msra.mxu1 %v1812_v53  ;;  %1062 = vmatpush.msra.mxu0 %v885_v35 }
  0xf9   :  { %1105 = vmatpush.msra.mxu1 %v1830_v1  ;;  %1066 = vmatpush.msra.mxu0 %v891_v45 }
  0xfb   :  { %1107 = vmatpush.msra.mxu1 %v1841_v49  ;;  %1070 = vmatpush.msra.mxu0 %v897_v46 }
  0xfd   :  { %1109 = vmatpush.msra.mxu1 %v1887_v61  ;;  %1074 = vmatpush.msra.mxu0 %v903_v52 }
  0xff   :  { %1111 = vmatpush.msra.mxu1 %v1889_v15  ;;  %1078 = vmatpush.msra.mxu0 %v909_v54 }
 0x101   :  { %1113 = vmatpush.msra.mxu1 %v1895_v37  ;;  %1082 = vmatpush.msra.mxu0 %v915_v42 }
 0x103   :  { %1115 = vmatpush.msra.mxu1 %v1907_v23  ;;  %1086 = vmatpush.msra.mxu0 %v921_v34 }
 0x105   :  { %1117 = vmatpush.msra.mxu1 %v1917_v7 }
 0x107   :  { %1119 = vmatpush.msra.mxu1 %v814_v8 }
 0x109   :  { %1121 = vmatpush.msra.mxu1 %v816_v19 }
 0x10b   :  { %1123 = vmatpush.msra.mxu1 %v818_v30 }
 0x14e   :  { %v619_v53 = vpop.f32.mrf.mxu0 }
 0x150   :  { %v658_v11 = vpop.f32.mrf.mxu1 }
 0x152   :  { %v565_v25 = vpop.f32.mrf.mxu3 }
 0x15a   :  { %v464_v39 = vpop.f32.mrf.mxu2  ;;  %v764_v58 = vpop.f32.mrf.mxu3 }
 0x15b   :  { %v465_v41 = vadd.f32 %v1138_v4, %v464_v39 }
 0x15d   :  { %v566_v9 = vadd.f32 %v565_v25, %v465_v41 }
 0x15f   :  { %v620_v57 = vadd.f32 %v619_v53, %v566_v9 }
 0x161   :  { %v659_v51 = vadd.f32 %v658_v11, %v620_v57 }
 0x162   :  { %v727_v1 = vpop.f32.mrf.mxu2 }
 0x163   :  { %v728_v17 = vadd.f32 %v727_v1, %v659_v51 }
 0x165   :  { %v765_v48 = vadd.f32 %v764_v58, %v728_v17 }
 0x167   :  { %v767_v49 = vmax.f32 %v765_v48, 0.0 }
 0x169   :  { %v820_v20 = vand.u32 4294901760, %v767_v49 }
 0x16b   :  { %v821_v14 = vsub.f32 %v767_v49, %v820_v20  ;;  %926 = vmatmul.f32.vlgmr.msrb.gmra.mxu1 %v820_v20 }
 0x16d   :  { %980 = vmatmul.f32.vlgmr.msrb.gmra.mxu2 %v821_v14  ;;  %v822_v16 = vand.u32 4294901760, %v821_v14 }
 0x16f   :  { %1019 = vmatmul.f32.vlgmr.msrb.gmra.mxu3 %v822_v16  ;;  %v823_v26 = vsub.f32 %v821_v14, %v822_v16 }
 0x171   :  { %v824_v60 = vand.u32 4294901760, %v823_v26 }
 0x173   :  { %825 = vmatmul.f32.vlgmr.msrb.gmra.mxu0 %v824_v60  ;;  %1125 = vmatmul.f32.vlgmr.msra.gmra.mxu1 %v820_v20 }
 0x17b   :  { %1088 = vmatmul.f32.vlgmr.msra.gmra.mxu0 %v820_v20 }
 0x1e8   :  { %v927_v62 = vpop.f32.mrf.mxu1 }
 0x1f0   :  { %v826_v28 = vpop.f32.mrf.mxu0  ;;  %v981_v15 = vpop.f32.mrf.mxu2 }
 0x1f1   :  { %v827_v55 = vadd.f32 %v1139_v5, %v826_v28  ;;  %v1126_v0 = vpop.f32.mrf.mxu1 }
 0x1f2   :  { %v1020_v37 = vpop.f32.mrf.mxu3 }
 0x1f3   :  { %v928_v61 = vadd.f32 %v927_v62, %v827_v55 }
 0x1f5   :  { %v982_v40 = vadd.f32 %v981_v15, %v928_v61 }
 0x1f7   :  { %v1021_v18 = vadd.f32 %v1020_v37, %v982_v40 }
 0x1f8   :  { %v1089_v22 = vpop.f32.mrf.mxu0 }
 0x1f9   :  { %v1090_v23 = vadd.f32 %v1089_v22, %v1021_v18 }
 0x1fb   :  { %v1127_v6 = vadd.f32 %v1126_v0, %v1090_v23 }
 0x1fd   :  { %v1129_v7 = vmax.f32 %v1127_v6, 0.0 }
 0x1ff   :  { %1130 = vst [vmem:[%s2045_s9] sm:$0xff] %v1129_v7 }

</bundles_post_ra>
